<compile_context>
chip_gen: v6e
topology: v6e:2x2x1
jax: 0.10.0
libtpu: 0.0.40
codegen_flags: <defaults>
</compile_context>

<pallas_src>
import functools

import jax
import jax.numpy as jnp
from jax import lax
from jax.experimental import pallas as pl
from jax.experimental.pallas import tpu as pltpu

_SUBLANE = 16   # bf16 sublane packing (second-minor tile multiple)
_LANE = 128     # lane tile multiple


def _cdiv(a: int, b: int) -> int:
    return -(-a // b)


def _round_up(a: int, b: int) -> int:
    return _cdiv(a, b) * b


def _tpu_vmem_and_cores():
    """Best-effort query of per-core VMEM capacity and TensorCores per chip."""
    cap, cores = 64 * 1024 * 1024, 1          # safe lower bound (v7x)
    try:
        info = pltpu.get_tpu_info()
        c = getattr(info, "vmem_capacity_bytes", None)
        if isinstance(c, int) and c > 0:
            cap = c
        for name in ("num_tensorcores", "tensorcore_count", "num_cores",
                     "cores_per_chip"):
            v = getattr(info, name, None)
            if isinstance(v, int) and v > 0:
                cores = v
                break
    except Exception:
        pass
    return cap, cores


_VMEM_CAP, _NUM_CORES = _tpu_vmem_and_cores()


def _vmem_bytes(tm: int, ti: int, H: int, out_itemsize: int) -> int:
    """Conservative VMEM footprint for one grid step (double-buffered blocks
    plus the compiler-managed f32 intermediates of the elementwise stage)."""
    in_b = 2  # bf16 compute dtype
    return (2 * tm * H * in_b             # x tile (double-buffered)
            + 2 * ti * H * in_b           # gate_w slice
            + 2 * ti * H * in_b           # up_w slice
            + 2 * H * ti * in_b           # down_w slice
            + 2 * tm * H * out_itemsize   # output tile
            + tm * H * 4                  # f32 accumulator scratch
            + tm * ti * 14)               # g/u/h f32 + bf16(h) temporaries


def _choose_tiles(M, I, H, out_itemsize, vmem_cap, num_cores, tm_hint, ti_hint):
    """Pick (tm, ti) that fit in ~70% of VMEM, favoring a large tm (arithmetic
    intensity ~ tm FLOP/byte against the streamed weights), then balance the
    tiles against the actual problem size."""
    budget = vmem_cap * 7 // 10
    tm_lim = _round_up(M, _SUBLANE)
    ti_lim = _round_up(I, _LANE)
    tm_cands = [tm_hint] if tm_hint else [512, 384, 256, 192, 128, 64, 32, 16]
    ti_cands = [ti_hint] if ti_hint else [1024, 512, 384, 256, 128]

    tm_sel, ti_sel = min(16, tm_lim), min(128, ti_lim)   # fallback (always works)
    done = False
    for tm_c in tm_cands:
        tm_c = min(tm_c, tm_lim)
        for ti_c in ti_cands:
            ti_c = min(ti_c, ti_lim)
            if _vmem_bytes(tm_c, ti_c, H, out_itemsize) <= budget:
                tm_sel, ti_sel, done = tm_c, ti_c, True
                break
        if done:
            break

    # Balanced row tiles; prefer n_m >= num_cores so the "parallel" M axis can
    # shard across TensorCores (v7x) instead of leaving a core idle.
    n_m = max(_cdiv(M, tm_sel), min(num_cores, max(_cdiv(M, _SUBLANE), 1)))
    tm_eff = _round_up(_cdiv(M, n_m), _SUBLANE)
    n_m = _cdiv(M, tm_eff)
    M_pad = n_m * tm_eff

    n_i = max(_cdiv(I, ti_sel), 1)
    ti_eff = _round_up(_cdiv(I, n_i), _LANE)
    n_i = _cdiv(I, ti_eff)
    I_pad = n_i * ti_eff
    return tm_eff, ti_eff, n_m, n_i, M_pad, I_pad


def _llama_mlp_kernel(x_ref, wg_ref, wu_ref, wd_ref, o_ref, acc_ref):
    """Fused gate/up/silu/down MLP body.

    x_ref   : (tm, H)   bf16
    wg_ref  : (ti, H)   bf16   gate_proj.weight slice (native (I, H) layout)
    wu_ref  : (ti, H)   bf16   up_proj.weight slice   (native (I, H) layout)
    wd_ref  : (H, ti)   bf16   down_proj.weight slice (native (H, I) layout)
    o_ref   : (tm, H)   output dtype
    acc_ref : (tm, H)   f32 accumulator over the intermediate (k) grid axis
    """
    k = pl.program_id(1)

    @pl.when(k == 0)
    def _():
        acc_ref[...] = jnp.zeros_like(acc_ref)

    x = x_ref[...]                                   # (tm, H) bf16
    dn = (((1,), (1,)), ((), ()))                    # contract last dims: A @ B^T

    g = lax.dot_general(x, wg_ref[...], dn,
                        preferred_element_type=jnp.float32)   # (tm, ti) f32
    u = lax.dot_general(x, wu_ref[...], dn,
                        preferred_element_type=jnp.float32)   # (tm, ti) f32

    # SiLU(g) * u; exp and approx reciprocal both run on the EUP slot.
    h = (g * pl.reciprocal(1.0 + jnp.exp(-g), approx=True)) * u

    acc_ref[...] += lax.dot_general(h.astype(wd_ref.dtype), wd_ref[...], dn,
                                    preferred_element_type=jnp.float32)  # (tm, H)

    @pl.when(k == pl.num_programs(1) - 1)
    def _():
        o_ref[...] = acc_ref[...].astype(o_ref.dtype)


@functools.partial(jax.jit, static_argnames=("tm", "ti"))
def llama_mlp(x, gate_w, up_w, down_w, *, tm=None, ti=None):
    """LlamaMLP forward.

    x: (batch, seq, hidden).  Weights in native PyTorch nn.Linear layout:
    gate_w, up_w: (intermediate, hidden); down_w: (hidden, intermediate).
    tm / ti optionally override the VMEM-derived tile sizes.
    """
    B, S, H = x.shape
    I = gate_w.shape[0]
    M = B * S
    out_dtype = x.dtype
    out_itemsize = jnp.dtype(out_dtype).itemsize
    cdt = jnp.bfloat16  # MXU compute dtype (cast is a no-op for bf16 weights)

    tm_eff, ti_eff, n_m, n_i, M_pad, I_pad = _choose_tiles(
        M, I, H, out_itemsize, _VMEM_CAP, _NUM_CORES, tm, ti)

    # Activations: flatten, cast, pad rows up to the tile multiple.
    x2 = x.reshape(M, H).astype(cdt)
    if M_pad != M:
        x2 = jnp.pad(x2, ((0, M_pad - M), (0, 0)))

    # Weights stay in native layouts (no transpose / interleave HBM passes);
    # zero-padding of the intermediate dim only fires for odd sizes and is
    # exact: silu(0)*0 = 0 and the padded down columns are zero.
    wg = gate_w.astype(cdt)
    wu = up_w.astype(cdt)
    wd = down_w.astype(cdt)
    if I_pad != I:
        wg = jnp.pad(wg, ((0, I_pad - I), (0, 0)))
        wu = jnp.pad(wu, ((0, I_pad - I), (0, 0)))
        wd = jnp.pad(wd, ((0, 0), (0, I_pad - I)))

    vmem_bytes = _vmem_bytes(tm_eff, ti_eff, H, out_itemsize)
    vmem_limit = int(min(max(vmem_bytes * 5 // 4, 32 * 1024 * 1024),
                         _VMEM_CAP * 98 // 100))

    cost = pl.CostEstimate(
        flops=6 * M * H * I,                   # gate + up + down matmuls
        transcendentals=M * I,                 # exp in SiLU
        bytes_accessed=int(M * H * (jnp.dtype(x.dtype).itemsize + out_itemsize)
                           + n_m * 3 * H * I_pad * 2),  # weights per M tile
    )

    out2 = pl.pallas_call(
        _llama_mlp_kernel,
        out_shape=jax.ShapeDtypeStruct((M_pad, H), out_dtype),
        grid_spec=pltpu.PrefetchScalarGridSpec(
            num_scalar_prefetch=0,
            grid=(n_m, n_i),
            in_specs=[
                pl.BlockSpec((tm_eff, H), lambda m, k: (m, 0)),   # x rows
                pl.BlockSpec((ti_eff, H), lambda m, k: (k, 0)),   # gate_w slice
                pl.BlockSpec((ti_eff, H), lambda m, k: (k, 0)),   # up_w slice
                pl.BlockSpec((H, ti_eff), lambda m, k: (0, k)),   # down_w slice
            ],
            out_specs=pl.BlockSpec((tm_eff, H), lambda m, k: (m, 0)),
            scratch_shapes=[pltpu.VMEM((tm_eff, H), jnp.float32)],
        ),
        compiler_params=pltpu.CompilerParams(
            dimension_semantics=("parallel", "arbitrary"),
            vmem_limit_bytes=vmem_limit,
        ),
        cost_estimate=cost,
    )(x2, wg, wu, wd)

    return out2[:M].reshape(B, S, H)


def llama_mlp_ref(x, gate_w, up_w, down_w):
    g = x @ gate_w.T
    u = x @ up_w.T
    return (g * jax.nn.sigmoid(g) * u) @ down_w.T


def _check(out, ref, tol):
    rel = float(jnp.max(jnp.abs(out - ref)) / (jnp.max(jnp.abs(ref)) + 1e-6))
    assert rel < tol, f"relative error {rel} exceeds {tol}"


if __name__ == "__main__":
    key = jax.random.PRNGKey(0)

    # Test 1: small, tile-aligned shapes (hidden=128, intermediate=256).
    batch, seq, hidden, intermediate = 2, 8, 128, 256
    kx, kg, ku, kd, key = jax.random.split(key, 5)
    x = jax.random.normal(kx, (batch, seq, hidden), dtype=jnp.float32)
    gate_w = jax.random.normal(kg, (intermediate, hidden), dtype=jnp.float32) * 0.02
    up_w = jax.random.normal(ku, (intermediate, hidden), dtype=jnp.float32) * 0.02
    down_w = jax.random.normal(kd, (hidden, intermediate), dtype=jnp.float32) * 0.02

    out = jax.block_until_ready(llama_mlp(x, gate_w, up_w, down_w))
    assert out.shape == (batch, seq, hidden)
    _check(out, llama_mlp_ref(x, gate_w, up_w, down_w), tol=5e-2)  # bf16 compute

    # Test 2: non-divisible M / intermediate sizes exercise the padding path.
    batch2, seq2, hidden2, inter2 = 1, 5, 128, 200
    kx, kg, ku, kd, key = jax.random.split(key, 5)
    x2 = jax.random.normal(kx, (batch2, seq2, hidden2), dtype=jnp.float32)
    gw2 = jax.random.normal(kg, (inter2, hidden2), dtype=jnp.float32) * 0.02
    uw2 = jax.random.normal(ku, (inter2, hidden2), dtype=jnp.float32) * 0.02
    dw2 = jax.random.normal(kd, (hidden2, inter2), dtype=jnp.float32) * 0.02

    out2 = jax.block_until_ready(llama_mlp(x2, gw2, uw2, dw2))
    assert out2.shape == (batch2, seq2, hidden2)
    _check(out2, llama_mlp_ref(x2, gw2, uw2, dw2), tol=5e-2)

    print("KERNEL_OK")
</pallas_src>

<mosaic_0001>
module attributes {stable_mosaic.version = 11 : i64} {
  func.func @_llama_mlp_kernel(%arg0: i32, %arg1: i32, %arg2: memref<16x128xbf16, #tpu.memory_space<vmem>>, %arg3: memref<256x128xbf16, #tpu.memory_space<vmem>>, %arg4: memref<256x128xbf16, #tpu.memory_space<vmem>>, %arg5: memref<128x256xbf16, #tpu.memory_space<vmem>>, %arg6: memref<16x128xf32, #tpu.memory_space<vmem>>, %arg7: memref<16x128xf32, #tpu.memory_space<vmem>>) attributes {dimension_semantics = [#tpu.dimension_semantics<parallel>, #tpu.dimension_semantics<arbitrary>], iteration_bounds = array<i64: 1, 1>, scalar_prefetch = 0 : i64, scratch_operands = 1 : i64, tpu.core_type = #tpu.core_type<tc>, window_params = [{transform_indices = @transform_0, window_bounds = array<i64: 16, 128>}, {transform_indices = @transform_1, window_bounds = array<i64: 256, 128>}, {transform_indices = @transform_2, window_bounds = array<i64: 256, 128>}, {transform_indices = @transform_3, window_bounds = array<i64: 128, 256>}, {transform_indices = @transform_4, window_bounds = array<i64: 16, 128>}]} {
    %c0_i32 = arith.constant 0 : i32
    %0 = arith.cmpi eq, %arg1, %c0_i32 : i32
    %1 = arith.extui %0 : i1 to i32
    %c0_i32_0 = arith.constant 0 : i32
    %2 = arith.cmpi ne, %1, %c0_i32_0 : i32
    scf.if %2 {
      %cst_18 = arith.constant 0.000000e+00 : f32
      %25 = vector.broadcast %cst_18 : f32 to vector<16x128xf32>
      %c0_19 = arith.constant 0 : index
      %c0_20 = arith.constant 0 : index
      %26 = vector.load %arg7[%c0_19, %c0_20] : memref<16x128xf32, #tpu.memory_space<vmem>>, vector<16x128xf32>
      tpu.vector_store %arg7[%c0_19, %c0_20], %25 {strides = array<i32>} : memref<16x128xf32, #tpu.memory_space<vmem>>, vector<16x128xf32>,
    } else {
    }
    %c0 = arith.constant 0 : index
    %c0_1 = arith.constant 0 : index
    %3 = vector.load %arg2[%c0, %c0_1] : memref<16x128xbf16, #tpu.memory_space<vmem>>, vector<16x128xbf16>
    %c0_2 = arith.constant 0 : index
    %c0_3 = arith.constant 0 : index
    %4 = vector.load %arg3[%c0_2, %c0_3] : memref<256x128xbf16, #tpu.memory_space<vmem>>, vector<256x128xbf16>
    %cst = arith.constant dense<0.000000e+00> : vector<16x256xf32>
    %5 = tpu.matmul %3, %4, %cst {dimension_numbers = #tpu.dot_dimension_numbers<[1], [1], [0], [0], [0, 0, 1, 0], [], []>} : vector<16x128xbf16>, vector<256x128xbf16>, vector<16x256xf32> -> vector<16x256xf32>
    %c0_4 = arith.constant 0 : index
    %c0_5 = arith.constant 0 : index
    %6 = vector.load %arg4[%c0_4, %c0_5] : memref<256x128xbf16, #tpu.memory_space<vmem>>, vector<256x128xbf16>
    %cst_6 = arith.constant dense<0.000000e+00> : vector<16x256xf32>
    %7 = tpu.matmul %3, %6, %cst_6 {dimension_numbers = #tpu.dot_dimension_numbers<[1], [1], [0], [0], [0, 0, 1, 0], [], []>} : vector<16x128xbf16>, vector<256x128xbf16>, vector<16x256xf32> -> vector<16x256xf32>
    %cst_7 = arith.constant 0.000000e+00 : f32
    %8 = vector.broadcast %cst_7 : f32 to vector<16x256xf32>
    %9 = arith.subf %8, %5 : vector<16x256xf32>
    %10 = math.exp %9 : vector<16x256xf32>
    %cst_8 = arith.constant 1.000000e+00 : f32
    %11 = vector.broadcast %cst_8 : f32 to vector<16x256xf32>
    %12 = arith.addf %11, %10 : vector<16x256xf32>
    %13 = tpu.reciprocal %12 {approx = true} : vector<16x256xf32> -> vector<16x256xf32>
    %14 = arith.mulf %5, %13 : vector<16x256xf32>
    %15 = arith.mulf %14, %7 : vector<16x256xf32>
    %c0_9 = arith.constant 0 : index
    %c0_10 = arith.constant 0 : index
    %16 = vector.load %arg7[%c0_9, %c0_10] : memref<16x128xf32, #tpu.memory_space<vmem>>, vector<16x128xf32>
    %17 = arith.truncf %15 : vector<16x256xf32> to vector<16x256xbf16>
    %c0_11 = arith.constant 0 : index
    %c0_12 = arith.constant 0 : index
    %18 = vector.load %arg5[%c0_11, %c0_12] : memref<128x256xbf16, #tpu.memory_space<vmem>>, vector<128x256xbf16>
    %cst_13 = arith.constant dense<0.000000e+00> : vector<16x128xf32>
    %19 = tpu.matmul %17, %18, %cst_13 {dimension_numbers = #tpu.dot_dimension_numbers<[1], [1], [0], [0], [0, 0, 1, 0], [], []>} : vector<16x256xbf16>, vector<128x256xbf16>, vector<16x128xf32> -> vector<16x128xf32>
    %20 = arith.addf %16, %19 : vector<16x128xf32>
    %c0_14 = arith.constant 0 : index
    %c0_15 = arith.constant 0 : index
    %21 = vector.load %arg7[%c0_14, %c0_15] : memref<16x128xf32, #tpu.memory_space<vmem>>, vector<16x128xf32>
    tpu.vector_store %arg7[%c0_14, %c0_15], %20 {strides = array<i32>} : memref<16x128xf32, #tpu.memory_space<vmem>>, vector<16x128xf32>,
    %c0_i32_16 = arith.constant 0 : i32
    %22 = arith.cmpi eq, %arg1, %c0_i32_16 : i32
    %23 = arith.extui %22 : i1 to i32
    %c0_i32_17 = arith.constant 0 : i32
    %24 = arith.cmpi ne, %23, %c0_i32_17 : i32
    scf.if %24 {
      %c0_18 = arith.constant 0 : index
      %c0_19 = arith.constant 0 : index
      %25 = vector.load %arg7[%c0_18, %c0_19] : memref<16x128xf32, #tpu.memory_space<vmem>>, vector<16x128xf32>
      %c0_20 = arith.constant 0 : index
      %c0_21 = arith.constant 0 : index
      %26 = vector.load %arg6[%c0_20, %c0_21] : memref<16x128xf32, #tpu.memory_space<vmem>>, vector<16x128xf32>
      tpu.vector_store %arg6[%c0_20, %c0_21], %25 {strides = array<i32>} : memref<16x128xf32, #tpu.memory_space<vmem>>, vector<16x128xf32>,
    } else {
    }
    return
  }
  func.func @transform_0(%arg0: i32, %arg1: i32) -> (i32, i32) {
    %c0_i32 = arith.constant 0 : i32
    %c0_i32_0 = arith.constant 0 : i32
    return %arg0, %c0_i32 : i32, i32
  }
  func.func @transform_1(%arg0: i32, %arg1: i32) -> (i32, i32) {
    %c0_i32 = arith.constant 0 : i32
    %c0_i32_0 = arith.constant 0 : i32
    return %arg1, %c0_i32 : i32, i32
  }
  func.func @transform_2(%arg0: i32, %arg1: i32) -> (i32, i32) {
    %c0_i32 = arith.constant 0 : i32
    %c0_i32_0 = arith.constant 0 : i32
    return %arg1, %c0_i32 : i32, i32
  }
  func.func @transform_3(%arg0: i32, %arg1: i32) -> (i32, i32) {
    %c0_i32 = arith.constant 0 : i32
    %c0_i32_0 = arith.constant 0 : i32
    return %c0_i32, %arg1 : i32, i32
  }
  func.func @transform_4(%arg0: i32, %arg1: i32) -> (i32, i32) {
    %c0_i32 = arith.constant 0 : i32
    %c0_i32_0 = arith.constant 0 : i32
    return %arg0, %c0_i32 : i32, i32
  }
}

</mosaic_0001>

<bundles_post_ra>
// kernel: llama_mlp.1
= control target key start
LH: loop header
LB: loop body
LE: loop exit
PB: predicated region body
PF: predicated region fallthrough
CT: control target
= control target key end

     0   :  { %s932_s0 = inlined_call_operand.vmem [shape: bf16[16,128], index: 0, kind: input, shape index: {}]   ;;  %s933_s1 = inlined_call_operand.vmem [shape: bf16[256,128], index: 1, kind: input, shape index: {}]   ;;  %s934_s2 = inlined_call_operand.vmem [shape: bf16[256,128], index: 2, kind: input, shape index: {}]   ;;  %s935_s3 = inlined_call_operand.vmem [shape: bf16[128,256], index: 3, kind: input, shape index: {}]   ;;  %s936_s4 = inlined_call_operand.hbm [shape: f32[16,128], index: 4, kind: output, shape index: {}]  }
   0x1   :  { %v659_v0 = vld [vmem:[%s933_s1 + $0x78] sm:$0xff]   ;;  %v661_v2 = vld [vmem:[%s933_s1 + $0x70] sm:$0xff]   ;;  %v663_v4 = vld [vmem:[%s933_s1 + $0x68] sm:$0xff]  }
   0x2   :  { %v660_v1 = vld [vmem:[%s933_s1 + $0x38] sm:$0xff]   ;;  %620 = vmatprep.subr.bf16.mxu0 %v659_v0  ;;  %v662_v3 = vld [vmem:[%s933_s1 + $0x30] sm:$0xff]   ;;  %v664_v8 = vld [vmem:[%s933_s1 + $0x28] sm:$0xff]  }
   0x3   :  { %621 = vmatpush3.bf16.xpose.msra.mxu0 %v660_v1  ;;  %v667_v5 = vld [vmem:[%s934_s2 + $0x78] sm:$0xff]   ;;  %v671_v7 = vld [vmem:[%s934_s2 + $0x70] sm:$0xff]   ;;  %v665_v9 = vld [vmem:[%s933_s1 + $0x60] sm:$0xff]  }
   0x4   :  { %622 = vmatprep.subr.bf16.mxu0 %v661_v2  ;;  %v668_v6 = vld [vmem:[%s934_s2 + $0x38] sm:$0xff]   ;;  %638 = vmatprep.subr.bf16.mxu1 %v667_v5  ;;  %v672_v10 = vld [vmem:[%s934_s2 + $0x30] sm:$0xff]   ;;  %v675_v11 = vld [vmem:[%s934_s2 + $0x68] sm:$0xff]  }
   0x5   :  { %639 = vmatpush3.bf16.xpose.msra.mxu1 %v668_v6  ;;  %v666_v12 = vld [vmem:[%s933_s1 + $0x20] sm:$0xff]   ;;  %v669_v13 = vld [vmem:[%s933_s1 + $0x58] sm:$0xff]   ;;  %v676_v14 = vld [vmem:[%s934_s2 + $0x28] sm:$0xff]  }
   0x6   :  { %640 = vmatprep.subr.bf16.mxu1 %v671_v7  ;;  %v679_v15 = vld [vmem:[%s934_s2 + $0x60] sm:$0xff]   ;;  %v670_v17 = vld [vmem:[%s933_s1 + $0x18] sm:$0xff]   ;;  %v673_v18 = vld [vmem:[%s933_s1 + $0x50] sm:$0xff]  }
   0x7   :  { %v684_v16 = vld [vmem:[%s932_s0] sm:$0xff]   ;;  %v683_v20 = vld [vmem:[%s934_s2 + $0x58] sm:$0xff]   ;;  %v674_v21 = vld [vmem:[%s933_s1 + $0x10] sm:$0xff]  }
   0x8   :  { %636 = vmatprep.mubr.bf16.mxu0 %v684_v16  ;;  %654 = vmatprep.mubr.bf16.mxu1 %v684_v16  ;;  %v680_v19 = vld [vmem:[%s934_s2 + $0x20] sm:$0xff]   ;;  %v685_v22 = vld [vmem:[%s934_s2 + $0x18] sm:$0xff]  }
   0xb   :  { %623 = vmatpush3.bf16.xpose.msra.mxu0 %v662_v3 }
   0xc   :  { %624 = vmatprep.subr.bf16.mxu0 %v663_v4 }
   0xd   :  { %641 = vmatpush3.bf16.xpose.msra.mxu1 %v672_v10 }
   0xe   :  { %642 = vmatprep.subr.bf16.mxu1 %v675_v11 }
  0x13   :  { %625 = vmatpush3.bf16.xpose.msra.mxu0 %v664_v8 }
  0x14   :  { %626 = vmatprep.subr.bf16.mxu0 %v665_v9 }
  0x15   :  { %643 = vmatpush3.bf16.xpose.msra.mxu1 %v676_v14 }
  0x16   :  { %644 = vmatprep.subr.bf16.mxu1 %v679_v15 }
  0x1b   :  { %627 = vmatpush3.bf16.xpose.msra.mxu0 %v666_v12 }
  0x1c   :  { %628 = vmatprep.subr.bf16.mxu0 %v669_v13 }
  0x1d   :  { %645 = vmatpush3.bf16.xpose.msra.mxu1 %v680_v19 }
  0x1e   :  { %646 = vmatprep.subr.bf16.mxu1 %v683_v20 }
  0x23   :  { %629 = vmatpush3.bf16.xpose.msra.mxu0 %v670_v17 }
  0x24   :  { %630 = vmatprep.subr.bf16.mxu0 %v673_v18 }
  0x25   :  { %9 = vsyncpa [#allocation4], 0  ;;  %v677_v23 = vld [vmem:[%s933_s1 + $0x48] sm:$0xff]   ;;  %v686_v24 = vld [vmem:[%s934_s2 + $0x50] sm:$0xff]   ;;  %647 = vmatpush3.bf16.xpose.msra.mxu1 %v685_v22 }
  0x26   :  { %648 = vmatprep.subr.bf16.mxu1 %v686_v24  ;;  %v678_v25 = vld [vmem:[%s933_s1 + $0x8] sm:$0xff]   ;;  %v687_v26 = vld [vmem:[%s934_s2 + $0x10] sm:$0xff]   ;;  %v681_v27 = vld [vmem:[%s933_s1 + $0x40] sm:$0xff]  }
  0x27   :  { %v688_v28 = vld [vmem:[%s934_s2 + $0x48] sm:$0xff]   ;;  %v682_v29 = vld [vmem:[%s933_s1] sm:$0xff]   ;;  %v694_v32 = vld [vmem:[%s935_s3 + $0x74] ss:$8 sps:$4 sm:$0xff]  }
  0x28   :  { %v689_v30 = vld [vmem:[%s934_s2 + $0x8] sm:$0xff]   ;;  %v690_v31 = vld [vmem:[%s934_s2 + $0x40] sm:$0xff]   ;;  %v692_v34 = vld [vmem:[%s935_s3 + $0x70] ss:$8 sps:$4 sm:$0xff]  }
  0x29   :  { %v691_v33 = vld [vmem:[%s934_s2] sm:$0xff]   ;;  %v700_v37 = vld [vmem:[%s935_s3 + $0x54] ss:$8 sps:$4 sm:$0xff]   ;;  %v698_v38 = vld [vmem:[%s935_s3 + $0x50] ss:$8 sps:$4 sm:$0xff]  }
  0x2a   :  { %v697_v35 = vld [vmem:[%s935_s3 + $0x64] ss:$8 sps:$4 sm:$0xff]   ;;  %v695_v36 = vld [vmem:[%s935_s3 + $0x60] ss:$8 sps:$4 sm:$0xff]   ;;  %v706_v41 = vld [vmem:[%s935_s3 + $0x34] ss:$8 sps:$4 sm:$0xff]  }
  0x2b   :  { %631 = vmatpush3.bf16.xpose.msra.mxu0 %v674_v21  ;;  %v703_v39 = vld [vmem:[%s935_s3 + $0x44] ss:$8 sps:$4 sm:$0xff]   ;;  %v701_v40 = vld [vmem:[%s935_s3 + $0x40] ss:$8 sps:$4 sm:$0xff]   ;;  %v704_v42 = vld [vmem:[%s935_s3 + $0x30] ss:$8 sps:$4 sm:$0xff]  }
  0x2c   :  { %632 = vmatprep.subr.bf16.mxu0 %v677_v23  ;;  %v709_v43 = vld [vmem:[%s935_s3 + $0x24] ss:$8 sps:$4 sm:$0xff]   ;;  %v707_v44 = vld [vmem:[%s935_s3 + $0x20] ss:$8 sps:$4 sm:$0xff]   ;;  %v712_v45 = vld [vmem:[%s935_s3 + $0x14] ss:$8 sps:$4 sm:$0xff]  }
  0x2d   :  { %649 = vmatpush3.bf16.xpose.msra.mxu1 %v687_v26  ;;  %v710_v46 = vld [vmem:[%s935_s3 + $0x10] ss:$8 sps:$4 sm:$0xff]   ;;  %v715_v47 = vld [vmem:[%s935_s3 + $0x4] ss:$8 sps:$4 sm:$0xff]   ;;  %v713_v48 = vld [vmem:[%s935_s3] ss:$8 sps:$4 sm:$0xff]  }
  0x2e   :  { %650 = vmatprep.subr.bf16.mxu1 %v688_v28  ;;  %s754_s3 = smov [#allocation3]  }
  0x2f   :  { %s560_s0 = sshll.u32 %s754_s3, 4  ;;  %s561_s0 = int_to_ptr.vmem [resolvable:$true] %s560_s0 }
  0x30   :  { %s732_s30 = scalar_lea.vmem %s561_s0, 256  ;;  %p737_p1 = scmp.lt.s32.totalorder %s561_s0, %s561_s0 }
  0x31   :  { %p733_p0 = scmp.ne.s32.totalorder %s561_s0, %s732_s30  ;;  %p738_p2 = scmp.lt.s32.totalorder %s732_s30, %s732_s30 }
  0x33   :  { %633 = vmatpush3.bf16.xpose.msra.mxu0 %v678_v25  ;;  %p739_p3 = por %p738_p2, %p737_p1 }
  0x34   :  { %634 = vmatprep.subr.bf16.mxu0 %v681_v27 }
  0x35   :  { %651 = vmatpush3.bf16.xpose.msra.mxu1 %v689_v30  ;;  %p740_p4 = pnand %p739_p3, %p733_p0 }
  0x36   :  { %652 = vmatprep.subr.bf16.mxu1 %v690_v31 }
  0x3b   :  { %635 = vmatpush3.bf16.xpose.msra.mxu0 %v682_v29 }
  0x3c   :  { %503 = vmatprep.subr.bf16.mxu0 %v694_v32 }
  0x3d   :  { %653 = vmatpush3.bf16.xpose.msra.mxu1 %v691_v33 }
  0x42   :  { %637 = vmatmul.mubr.bf16.vlgmr.msra.gmra.mxu0 %v684_v16 }
  0x43   :  { %504 = vmatpush1.bf16.xpose.msra.mxu0 %v692_v34 }
  0x44   :  { %505 = vmatprep.subr.bf16.mxu0 %v697_v35  ;;  %655 = vmatmul.mubr.bf16.vlgmr.msra.gmra.mxu1 %v684_v16 }
  0x4b   :  { %506 = vmatpush1.bf16.xpose.msra.mxu0 %v695_v36 }
  0x4c   :  { %507 = vmatprep.subr.bf16.mxu0 %v700_v37 }
  0x53   :  { %508 = vmatpush1.bf16.xpose.msra.mxu0 %v698_v38 }
  0x54   :  { %509 = vmatprep.subr.bf16.mxu0 %v703_v39 }
  0x5b   :  { %510 = vmatpush1.bf16.xpose.msra.mxu0 %v701_v40 }
  0x5c   :  { %511 = vmatprep.subr.bf16.mxu0 %v706_v41 }
  0x63   :  { %512 = vmatpush1.bf16.xpose.msra.mxu0 %v704_v42 }
  0x64   :  { %513 = vmatprep.subr.bf16.mxu0 %v709_v43 }
  0x6b   :  { %514 = vmatpush1.bf16.xpose.msra.mxu0 %v707_v44 }
  0x6c   :  { %515 = vmatprep.subr.bf16.mxu0 %v712_v45 }
  0x73   :  { %516 = vmatpush1.bf16.xpose.msra.mxu0 %v710_v46 }
  0x74   :  { %517 = vmatprep.subr.bf16.mxu0 %v715_v47 }
  0x7b   :  { %518 = vmatpush1.bf16.xpose.msra.mxu0 %v713_v48 }
 0x102   :  { %v195_v49 = vpop.f32.mrf.mxu0 }
 0x103   :  { %v375_v50 = vsub.f32 0.0, %v195_v49 }
 0x104   :  { %v197_v51 = vpop.f32.mrf.mxu0  ;;  %v366_v5 = vpop.f32.mrf.mxu1 }
 0x105   :  { %v379_v52 = vmul.f32 1.442695, %v375_v50  ;;  %v376_v53 = vsub.f32 0.0, %v197_v51 }
 0x106   :  { %v199_v54 = vpop.f32.mrf.mxu0  ;;  %v368_v6 = vpop.f32.mrf.mxu1 }
 0x107   :  { %716 = vpow2.f32 %v379_v52  ;;  %v381_v55 = vmul.f32 1.442695, %v376_v53  ;;  %v377_v56 = vsub.f32 0.0, %v199_v54 }
 0x108   :  { %v201_v57 = vpop.f32.mrf.mxu0  ;;  %v370_v10 = vpop.f32.mrf.mxu1 }
 0x109   :  { %718 = vpow2.f32 %v381_v55  ;;  %v383_v58 = vmul.f32 1.442695, %v377_v56  ;;  %v378_v59 = vsub.f32 0.0, %v201_v57 }
 0x10a   :  { %v372_v17 = vpop.f32.mrf.mxu1 }
 0x10b   :  { %720 = vpow2.f32 %v383_v58  ;;  %v385_v60 = vmul.f32 1.442695, %v378_v59 }
 0x10d   :  { %722 = vpow2.f32 %v385_v60 }
 0x114   :  { %v717_v61 = vpop.eup %716 }
 0x115   :  { %v387_v63 = vadd.f32 1.0, %v717_v61 }
 0x116   :  { %v719_v62 = vpop.eup %718 }
 0x117   :  { %v388_v0 = vadd.f32 1.0, %v719_v62 }
 0x118   :  { %v721_v1 = vpop.eup %720 }
 0x119   :  { %724 = vrcp.f32 %v388_v0  ;;  %v389_v2 = vadd.f32 1.0, %v721_v1 }
 0x11a   :  { %v723_v3 = vpop.eup %722  ;;  %726 = vrcp.f32 %v387_v63 }
 0x11b   :  { %728 = vrcp.f32 %v389_v2  ;;  %v390_v4 = vadd.f32 1.0, %v723_v3 }
 0x11d   :  { %730 = vrcp.f32 %v390_v4 }
 0x126   :  { %v725_v7 = vpop.eup %724 }
 0x127   :  { %v727_v8 = vpop.eup %726  ;;  %v396_v11 = vmul.f32 %v725_v7, %v197_v51 }
 0x128   :  { %v729_v9 = vpop.eup %728  ;;  %v395_v14 = vmul.f32 %v727_v8, %v195_v49 }
 0x129   :  { %v397_v12 = vmul.f32 %v729_v9, %v199_v54  ;;  %v400_v18 = vmul.f32 %v396_v11, %v368_v6 }
 0x12a   :  { %v731_v13 = vpop.eup %730  ;;  %v399_v20 = vmul.f32 %v395_v14, %v366_v5 }
 0x12b   :  { %v398_v15 = vmul.f32 %v731_v13, %v201_v57  ;;  %v401_v16 = vmul.f32 %v397_v12, %v370_v10 }
 0x12d   :  { %v402_v19 = vmul.f32 %v398_v15, %v372_v17  ;;  %v405_v22 = vpack.c.bf16 %v401_v16, %v399_v20 }
 0x12f   :  { %v406_v21 = vpack.c.bf16 %v402_v19, %v400_v18 }
 0x131   :  { %535 = vmatprep.mubr.bf16.mxu0 %v406_v21 }
 0x132   :  { %536 = vmatmul.mubr.bf16.vlgmr.msra.gmra.mxu0 %v405_v22 }
 0x1f2   :  { %v537_v23 = vpop.f32.mrf.mxu0 }
 0x1f3   :  { %553 = vst [vmem:[#allocation3] sm:$0xff] %v537_v23 }
 0x1f4   :  { %v539_v24 = vpop.f32.mrf.mxu0 }
 0x1f6   :  { %v540_v25 = vpop.f32.mrf.mxu0 }
 0x1f7   :  { %554 = vst [vmem:[#allocation3 + $0x8] sm:$0xff] %v540_v25 }
 0x1f8   :  { %v542_v26 = vpop.f32.mrf.mxu0 }
 0x1f9   :  { %743 = shalt.err (!%p740_p4)
}
 0x1fa   :  { %s755_s5 = smov 128   ;;  %s756_s6 = smov 8  }
 0x1fb   :  { %566 = dma.vmem_to_hbm [thread:$0]  %s561_s0, 256, %s936_s4, [#allocation4], %s755_s5, %s755_s5, %s756_s6  }
 0x1fc   :  { %752 = dma.done.wait [#allocation4], 256  }
 0x1fd   :  { %753 = vsyncadd [#allocation4], 4294967040 }
 0x1fe   :  { %570 = vsyncpa [#allocation4], 1 }

</bundles_post_ra>
